<compile_context>
chip_gen: v5e
topology: v5e:2x2
jax: 0.10.0
libtpu: 0.0.40
codegen_flags: <defaults>
</compile_context>

<pallas_src>
import functools

import jax
import jax.numpy as jnp
from jax.experimental import pallas as pl
from jax.experimental.pallas import tpu as pltpu


def _sae_kernel(x_ref, w1_ref, b1_ref, w2_ref, b2_ref, w3_ref, b3_ref,
                w4_ref, b4_ref, o_ref):
    # Encoder
    h = jnp.dot(x_ref[...], w1_ref[...], preferred_element_type=jnp.float32)
    h = jnp.maximum(h + b1_ref[...], 0.0)                    # Linear(D,128)+ReLU
    h = jnp.dot(h, w2_ref[...], preferred_element_type=jnp.float32)
    h = jnp.maximum(h + b2_ref[...], 0.0)                    # Linear(128,64)+ReLU
    # Decoder
    h = jnp.dot(h, w3_ref[...], preferred_element_type=jnp.float32)
    h = jnp.maximum(h + b3_ref[...], 0.0)                    # Linear(64,128)+ReLU
    y = jnp.dot(h, w4_ref[...], preferred_element_type=jnp.float32)
    y = jax.nn.sigmoid(y + b4_ref[...])                      # Linear(128,D)+Sigmoid
    o_ref[...] = y.astype(o_ref.dtype)


def _round_up(v, m):
    return ((v + m - 1) // m) * m


def _choose_block_b(block_b, batch):
    """Pick a batch tile: large, multiple of 8, and >=2 grid steps when possible."""
    bb = min(block_b, batch)
    # Split a single full-extent step in two so both v7x TensorCores get work.
    if bb == batch and batch >= 16 and (batch // 2) % 8 == 0:
        bb = batch // 2
    if bb < batch:
        bb = max(8, (bb // 8) * 8)
    return bb


def _choose_vmem_limit(bb, d_pad):
    """Explicit scoped-VMEM budget with headroom, capped vs. physical VMEM."""
    tile_bytes = bb * d_pad * 4                                   # one x/out tile
    weight_bytes = (d_pad * 128 + 128 * 64 + 64 * 128 + 128 * d_pad) * 4
    bias_bytes = (128 + 64 + 128 + d_pad) * 4
    # double-buffered in/out tiles + (double-buffered) weights + f32 hidden
    # activations + slack for the compiler's internal scratch.
    needed = (2 * (2 * tile_bytes + weight_bytes + bias_bytes)
              + 4 * bb * 128 * 4 + (4 << 20))
    try:
        cap = int(pltpu.get_tpu_info().vmem_capacity_bytes * 3 // 4)
    except Exception:  # pragma: no cover - conservative fallback (fits v7x 64 MiB)
        cap = 48 << 20
    return int(min(max(needed, 16 << 20), cap))


@functools.partial(jax.jit, static_argnames=("block_b",))
def sparse_autoencoder_forward(x, params, block_b=512):
    """x: (B, input_dim) float32. params: dict of (in,out) weights + (1,out) biases."""
    B, D = x.shape
    w1, b1 = params["w1"], params["b1"]   # (D,128), (1,128)
    w2, b2 = params["w2"], params["b2"]   # (128,64), (1,64)
    w3, b3 = params["w3"], params["b3"]   # (64,128), (1,128)
    w4, b4 = params["w4"], params["b4"]   # (128,D), (1,D)

    # --- Lane-dense feature axis: pad D to a multiple of 128 (zeros). ---
    D_pad = max(128, _round_up(D, 128))
    if D_pad != D:
        pad = D_pad - D
        x_p = jnp.pad(x, ((0, 0), (0, pad)))
        w1_p = jnp.pad(w1, ((0, pad), (0, 0)))        # zero rows: no contribution
        w4_p = jnp.pad(w4, ((0, 0), (0, pad)))        # padded outputs sliced away
        b4_p = jnp.pad(b4, ((0, 0), (0, pad)))
    else:
        x_p, w1_p, w4_p, b4_p = x, w1, w4, b4

    bb = _choose_block_b(block_b, B)
    grid = (pl.cdiv(B, bb),)

    # Weights/biases: whole, constant-index blocks -> DMA'd once, kept resident
    # in VMEM across the batch grid (not re-fetched per step).
    full = lambda arr: pl.BlockSpec(arr.shape, lambda i: (0,) * arr.ndim)

    flops = 2 * B * (2 * D_pad * 128 + 2 * 128 * 64)
    bytes_accessed = (2 * B * D_pad * 4
                      + (D_pad * 128 + 128 * 64 + 64 * 128 + 128 * D_pad) * 4
                      + (128 + 64 + 128 + D_pad) * 4)
    cost = pl.CostEstimate(flops=int(flops),
                           transcendentals=int(B * D_pad),
                           bytes_accessed=int(bytes_accessed))

    out_padded = pl.pallas_call(
        _sae_kernel,
        out_shape=jax.ShapeDtypeStruct((B, D_pad), x.dtype),
        grid_spec=pl.GridSpec(
            grid=grid,
            in_specs=[
                pl.BlockSpec((bb, D_pad), lambda i: (i, 0)),   # x batch tile
                full(w1_p), full(b1),
                full(w2), full(b2),
                full(w3), full(b3),
                full(w4_p), full(b4_p),
            ],
            out_specs=pl.BlockSpec((bb, D_pad), lambda i: (i, 0)),
        ),
        compiler_params=pltpu.CompilerParams(
            dimension_semantics=("parallel",),
            vmem_limit_bytes=_choose_vmem_limit(bb, D_pad),
        ),
        cost_estimate=cost,
    )(x_p, w1_p, b1, w2, b2, w3, b3, w4_p, b4_p)

    return out_padded[:, :D] if D_pad != D else out_padded


def init_params(key, input_dim):
    """Deterministic init mimicking PyTorch nn.Linear (uniform +-1/sqrt(fan_in)).
    Weights stored transposed relative to PyTorch, i.e. (in, out)."""
    dims = [(input_dim, 128), (128, 64), (64, 128), (128, input_dim)]
    params = {}
    for idx, (fan_in, fan_out) in enumerate(dims, start=1):
        key, kw, kb = jax.random.split(key, 3)
        bound = 1.0 / jnp.sqrt(fan_in)
        params[f"w{idx}"] = jax.random.uniform(
            kw, (fan_in, fan_out), jnp.float32, -bound, bound)
        params[f"b{idx}"] = jax.random.uniform(
            kb, (1, fan_out), jnp.float32, -bound, bound)
    return params


def reference_forward(x, params):
    h = jnp.maximum(x @ params["w1"] + params["b1"], 0.0)
    h = jnp.maximum(h @ params["w2"] + params["b2"], 0.0)
    h = jnp.maximum(h @ params["w3"] + params["b3"], 0.0)
    return jax.nn.sigmoid(h @ params["w4"] + params["b4"])


if __name__ == "__main__":
    INPUT_DIM = 32
    BATCH = 256          # >= 2 batch grid steps after auto-split (both v7x TCs busy)

    key = jax.random.PRNGKey(0)
    key, kx = jax.random.split(key)
    x = jax.random.normal(kx, (BATCH, INPUT_DIM), dtype=jnp.float32)
    params = init_params(key, INPUT_DIM)

    out = sparse_autoencoder_forward(x, params, block_b=512)
    out = jax.block_until_ready(out)

    ref = reference_forward(x, params)
    assert out.shape == (BATCH, INPUT_DIM)
    assert jnp.allclose(out, ref, atol=1e-5, rtol=1e-5), "mismatch vs reference"

    print("KERNEL_OK")
</pallas_src>

<mosaic_0001>
module attributes {stable_mosaic.version = 11 : i64} {
  func.func @_sae_kernel(%arg0: i32, %arg1: memref<128x128xf32, #tpu.memory_space<vmem>>, %arg2: memref<128x128xf32, #tpu.memory_space<vmem>>, %arg3: memref<1x128xf32, #tpu.memory_space<vmem>>, %arg4: memref<128x64xf32, #tpu.memory_space<vmem>>, %arg5: memref<1x64xf32, #tpu.memory_space<vmem>>, %arg6: memref<64x128xf32, #tpu.memory_space<vmem>>, %arg7: memref<1x128xf32, #tpu.memory_space<vmem>>, %arg8: memref<128x128xf32, #tpu.memory_space<vmem>>, %arg9: memref<1x128xf32, #tpu.memory_space<vmem>>, %arg10: memref<128x128xf32, #tpu.memory_space<vmem>>) attributes {dimension_semantics = [#tpu.dimension_semantics<parallel>], iteration_bounds = array<i64: 2>, scalar_prefetch = 0 : i64, scratch_operands = 0 : i64, tpu.core_type = #tpu.core_type<tc>, window_params = [{transform_indices = @transform_0, window_bounds = array<i64: 128, 128>}, {pipeline_mode = #tpu.pipeline_mode<synchronous>, transform_indices = @transform_1, window_bounds = array<i64: 128, 128>}, {pipeline_mode = #tpu.pipeline_mode<synchronous>, transform_indices = @transform_2, window_bounds = array<i64: 1, 128>}, {pipeline_mode = #tpu.pipeline_mode<synchronous>, transform_indices = @transform_3, window_bounds = array<i64: 128, 64>}, {pipeline_mode = #tpu.pipeline_mode<synchronous>, transform_indices = @transform_4, window_bounds = array<i64: 1, 64>}, {pipeline_mode = #tpu.pipeline_mode<synchronous>, transform_indices = @transform_5, window_bounds = array<i64: 64, 128>}, {pipeline_mode = #tpu.pipeline_mode<synchronous>, transform_indices = @transform_6, window_bounds = array<i64: 1, 128>}, {pipeline_mode = #tpu.pipeline_mode<synchronous>, transform_indices = @transform_7, window_bounds = array<i64: 128, 128>}, {pipeline_mode = #tpu.pipeline_mode<synchronous>, transform_indices = @transform_8, window_bounds = array<i64: 1, 128>}, {transform_indices = @transform_9, window_bounds = array<i64: 128, 128>}]} {
    %c0 = arith.constant 0 : index
    %c0_0 = arith.constant 0 : index
    %0 = vector.load %arg1[%c0, %c0_0] : memref<128x128xf32, #tpu.memory_space<vmem>>, vector<128x128xf32>
    %c0_1 = arith.constant 0 : index
    %c0_2 = arith.constant 0 : index
    %1 = vector.load %arg2[%c0_1, %c0_2] : memref<128x128xf32, #tpu.memory_space<vmem>>, vector<128x128xf32>
    %cst = arith.constant dense<0.000000e+00> : vector<128x128xf32>
    %2 = tpu.matmul %0, %1, %cst {dimension_numbers = #tpu.dot_dimension_numbers<[1], [0], [0], [1], [0, 0, 1, 1], [], []>} : vector<128x128xf32>, vector<128x128xf32>, vector<128x128xf32> -> vector<128x128xf32>
    %c0_3 = arith.constant 0 : index
    %c0_4 = arith.constant 0 : index
    %3 = vector.load %arg3[%c0_3, %c0_4] : memref<1x128xf32, #tpu.memory_space<vmem>>, vector<1x128xf32>
    %4 = vector.broadcast %3 : vector<1x128xf32> to vector<128x128xf32>
    %5 = arith.addf %2, %4 : vector<128x128xf32>
    %cst_5 = arith.constant 0.000000e+00 : f32
    %6 = vector.broadcast %cst_5 : f32 to vector<128x128xf32>
    %7 = arith.maximumf %5, %6 : vector<128x128xf32>
    %c0_6 = arith.constant 0 : index
    %c0_7 = arith.constant 0 : index
    %8 = vector.load %arg4[%c0_6, %c0_7] : memref<128x64xf32, #tpu.memory_space<vmem>>, vector<128x64xf32>
    %cst_8 = arith.constant dense<0.000000e+00> : vector<128x64xf32>
    %9 = tpu.matmul %7, %8, %cst_8 {dimension_numbers = #tpu.dot_dimension_numbers<[1], [0], [0], [1], [0, 0, 1, 1], [], []>} : vector<128x128xf32>, vector<128x64xf32>, vector<128x64xf32> -> vector<128x64xf32>
    %c0_9 = arith.constant 0 : index
    %c0_10 = arith.constant 0 : index
    %10 = vector.load %arg5[%c0_9, %c0_10] : memref<1x64xf32, #tpu.memory_space<vmem>>, vector<1x64xf32>
    %11 = vector.broadcast %10 : vector<1x64xf32> to vector<128x64xf32>
    %12 = arith.addf %9, %11 : vector<128x64xf32>
    %cst_11 = arith.constant 0.000000e+00 : f32
    %13 = vector.broadcast %cst_11 : f32 to vector<128x64xf32>
    %14 = arith.maximumf %12, %13 : vector<128x64xf32>
    %c0_12 = arith.constant 0 : index
    %c0_13 = arith.constant 0 : index
    %15 = vector.load %arg6[%c0_12, %c0_13] : memref<64x128xf32, #tpu.memory_space<vmem>>, vector<64x128xf32>
    %cst_14 = arith.constant dense<0.000000e+00> : vector<128x128xf32>
    %16 = tpu.matmul %14, %15, %cst_14 {dimension_numbers = #tpu.dot_dimension_numbers<[1], [0], [0], [1], [0, 0, 1, 1], [], []>} : vector<128x64xf32>, vector<64x128xf32>, vector<128x128xf32> -> vector<128x128xf32>
    %c0_15 = arith.constant 0 : index
    %c0_16 = arith.constant 0 : index
    %17 = vector.load %arg7[%c0_15, %c0_16] : memref<1x128xf32, #tpu.memory_space<vmem>>, vector<1x128xf32>
    %18 = vector.broadcast %17 : vector<1x128xf32> to vector<128x128xf32>
    %19 = arith.addf %16, %18 : vector<128x128xf32>
    %cst_17 = arith.constant 0.000000e+00 : f32
    %20 = vector.broadcast %cst_17 : f32 to vector<128x128xf32>
    %21 = arith.maximumf %19, %20 : vector<128x128xf32>
    %c0_18 = arith.constant 0 : index
    %c0_19 = arith.constant 0 : index
    %22 = vector.load %arg8[%c0_18, %c0_19] : memref<128x128xf32, #tpu.memory_space<vmem>>, vector<128x128xf32>
    %cst_20 = arith.constant dense<0.000000e+00> : vector<128x128xf32>
    %23 = tpu.matmul %21, %22, %cst_20 {dimension_numbers = #tpu.dot_dimension_numbers<[1], [0], [0], [1], [0, 0, 1, 1], [], []>} : vector<128x128xf32>, vector<128x128xf32>, vector<128x128xf32> -> vector<128x128xf32>
    %c0_21 = arith.constant 0 : index
    %c0_22 = arith.constant 0 : index
    %24 = vector.load %arg9[%c0_21, %c0_22] : memref<1x128xf32, #tpu.memory_space<vmem>>, vector<1x128xf32>
    %25 = vector.broadcast %24 : vector<1x128xf32> to vector<128x128xf32>
    %26 = arith.addf %23, %25 : vector<128x128xf32>
    %27 = arith.negf %26 : vector<128x128xf32>
    %28 = math.exp %27 : vector<128x128xf32>
    %cst_23 = arith.constant 1.000000e+00 : f32
    %29 = vector.broadcast %cst_23 : f32 to vector<128x128xf32>
    %30 = arith.addf %29, %28 : vector<128x128xf32>
    %31 = arith.divf %29, %30 : vector<128x128xf32>
    %c0_24 = arith.constant 0 : index
    %c0_25 = arith.constant 0 : index
    %32 = vector.load %arg10[%c0_24, %c0_25] : memref<128x128xf32, #tpu.memory_space<vmem>>, vector<128x128xf32>
    tpu.vector_store %arg10[%c0_24, %c0_25], %31 {strides = array<i32>} : memref<128x128xf32, #tpu.memory_space<vmem>>, vector<128x128xf32>,
    return
  }
  func.func @transform_0(%arg0: i32) -> (i32, i32) {
    %c0_i32 = arith.constant 0 : i32
    %c0_i32_0 = arith.constant 0 : i32
    return %arg0, %c0_i32 : i32, i32
  }
  func.func @transform_1(%arg0: i32) -> (i32, i32) {
    %c0_i32 = arith.constant 0 : i32
    %c0_i32_0 = arith.constant 0 : i32
    %c0_i32_1 = arith.constant 0 : i32
    return %c0_i32, %c0_i32_0 : i32, i32
  }
  func.func @transform_2(%arg0: i32) -> (i32, i32) {
    %c0_i32 = arith.constant 0 : i32
    %c0_i32_0 = arith.constant 0 : i32
    %c0_i32_1 = arith.constant 0 : i32
    return %c0_i32, %c0_i32_0 : i32, i32
  }
  func.func @transform_3(%arg0: i32) -> (i32, i32) {
    %c0_i32 = arith.constant 0 : i32
    %c0_i32_0 = arith.constant 0 : i32
    %c0_i32_1 = arith.constant 0 : i32
    return %c0_i32, %c0_i32_0 : i32, i32
  }
  func.func @transform_4(%arg0: i32) -> (i32, i32) {
    %c0_i32 = arith.constant 0 : i32
    %c0_i32_0 = arith.constant 0 : i32
    %c0_i32_1 = arith.constant 0 : i32
    return %c0_i32, %c0_i32_0 : i32, i32
  }
  func.func @transform_5(%arg0: i32) -> (i32, i32) {
    %c0_i32 = arith.constant 0 : i32
    %c0_i32_0 = arith.constant 0 : i32
    %c0_i32_1 = arith.constant 0 : i32
    return %c0_i32, %c0_i32_0 : i32, i32
  }
  func.func @transform_6(%arg0: i32) -> (i32, i32) {
    %c0_i32 = arith.constant 0 : i32
    %c0_i32_0 = arith.constant 0 : i32
    %c0_i32_1 = arith.constant 0 : i32
    return %c0_i32, %c0_i32_0 : i32, i32
  }
  func.func @transform_7(%arg0: i32) -> (i32, i32) {
    %c0_i32 = arith.constant 0 : i32
    %c0_i32_0 = arith.constant 0 : i32
    %c0_i32_1 = arith.constant 0 : i32
    return %c0_i32, %c0_i32_0 : i32, i32
  }
  func.func @transform_8(%arg0: i32) -> (i32, i32) {
    %c0_i32 = arith.constant 0 : i32
    %c0_i32_0 = arith.constant 0 : i32
    %c0_i32_1 = arith.constant 0 : i32
    return %c0_i32, %c0_i32_0 : i32, i32
  }
  func.func @transform_9(%arg0: i32) -> (i32, i32) {
    %c0_i32 = arith.constant 0 : i32
    %c0_i32_0 = arith.constant 0 : i32
    return %arg0, %c0_i32 : i32, i32
  }
}

</mosaic_0001>

<bundles_post_ra>
// kernel: sparse_autoencoder_forward.1
= control target key start
LH: loop header
LB: loop body
LE: loop exit
PB: predicated region body
PF: predicated region fallthrough
CT: control target
= control target key end

     0   :  { %s1334_s30 = smov 0   ;;  %s1644_s0 = inlined_call_operand.vmem [shape: f32[256,128], index: 0, kind: input, shape index: {}]   ;;  %s1645_s1 = inlined_call_operand.vmem [shape: f32[128,128], index: 1, kind: input, shape index: {}]   ;;  %s1646_s2 = inlined_call_operand.vmem [shape: f32[1,128], index: 2, kind: input, shape index: {}]   ;;  %s1647_s3 = inlined_call_operand.vmem [shape: f32[128,64], index: 3, kind: input, shape index: {}]   ;;  %s1648_s4 = inlined_call_operand.vmem [shape: f32[1,64], index: 4, kind: input, shape index: {}]   ;;  %s1649_s5 = inlined_call_operand.vmem [shape: f32[64,128], index: 5, kind: input, shape index: {}]   ;;  %s1650_s6 = inlined_call_operand.vmem [shape: f32[1,128], index: 6, kind: input, shape index: {}]   ;;  %s1651_s7 = inlined_call_operand.vmem [shape: f32[128,128], index: 7, kind: input, shape index: {}]   ;;  %s1652_s8 = inlined_call_operand.vmem [shape: f32[1,128], index: 8, kind: input, shape index: {}]   ;;  %s1653_s9 = inlined_call_operand.vmem [shape: f32[256,128], index: 9, kind: output, shape index: {}]  }
   0x1 LB: > { %s1157_s10 = sadd.s32 4294967295, %s1282_s30   ;;  %p1161_p0 = scmp.ge.s32.totalorder %s1282_s30, 1  ;;  %s1282_s30 = sphi %s1334_s30, %s19_s30  }
   0x2   : > { %p288_p1 = scmp.lt.s32.totalorder %s1282_s30, 3 }
   0x4   : > { %p289_p2 = pnand %p1161_p0, %p288_p1 }
   0x5   : > { %s1162_s27 = sshll.u32 (!%p289_p2), %s1157_s10, 4 }
   0x6   : > { %292 = sbr.rel (%p289_p2) target bundleno = 722 (0x2d2), region = 56  ;;  %p325_p3 = scmp.lt.s32.totalorder (!%p289_p2), %s1162_s27, 31 }
   0xb   : > { %v367_v0 = vld [vmem:[%s1645_s1 + $0x78] sm:$0xff]  ;;  %v366_v1 = vld [vmem:[%s1645_s1 + $0x70] sm:$0xff]  ;;  %v365_v2 = vld [vmem:[%s1645_s1 + $0x68] sm:$0xff]  ;;  %s1655_s27 = smov (!%p325_p3, %s1162_s27), 31  ;;  %vm566_vm0 = vcmask 523264  }
   0xc   : > { %372 = vmatpush.msra.mxu0 %v367_v0  ;;  %v364_v3 = vld [vmem:[%s1645_s1 + $0x60] sm:$0xff]  ;;  %v363_v4 = vld [vmem:[%s1645_s1 + $0x58] sm:$0xff]  ;;  %v362_v5 = vld [vmem:[%s1645_s1 + $0x50] sm:$0xff]  ;;  %s1163_s18 = sshll.u32 %s1655_s27, 3 }
   0xd   : > { %v361_v6 = vld [vmem:[%s1645_s1 + $0x48] sm:$0xff]  ;;  %v360_v7 = vld [vmem:[%s1645_s1 + $0x40] sm:$0xff]  ;;  %v359_v8 = vld [vmem:[%s1645_s1 + $0x38] sm:$0xff]  ;;  %s1395_s25 = scalar_lea.vmem %s1644_s0, %s1163_s18  ;;  %s1611_s11 = scalar_lea.vmem %s1653_s9, %s1163_s18 }
   0xe   : > { %373 = vmatpush.msra.mxu0 %v366_v1  ;;  %v358_v9 = vld [vmem:[%s1645_s1 + $0x30] sm:$0xff]  ;;  %v357_v10 = vld [vmem:[%s1645_s1 + $0x28] sm:$0xff]  ;;  %v356_v11 = vld [vmem:[%s1645_s1 + $0x20] sm:$0xff] }
   0xf   : > { %v355_v12 = vld [vmem:[%s1645_s1 + $0x18] sm:$0xff]  ;;  %v354_v13 = vld [vmem:[%s1645_s1 + $0x10] sm:$0xff]  ;;  %v353_v14 = vld [vmem:[%s1645_s1 + $0x8] sm:$0xff] }
  0x10   : > { %374 = vmatpush.msra.mxu0 %v365_v2  ;;  %v352_v15 = vld [vmem:[%s1645_s1] sm:$0xff]  ;;  %v337_v17 = vld [vmem:[%s1395_s25 + $0x8] sm:$0xff]  ;;  %v338_v18 = vld [vmem:[%s1395_s25 + $0x10] sm:$0xff] }
  0x11   : > { %v336_v16 = vld [vmem:[%s1395_s25] sm:$0xff]  ;;  %v339_v19 = vld [vmem:[%s1395_s25 + $0x18] sm:$0xff]  ;;  %v341_v21 = vld [vmem:[%s1395_s25 + $0x28] sm:$0xff] }
  0x12   : > { %375 = vmatpush.msra.mxu0 %v364_v3  ;;  %v340_v20 = vld [vmem:[%s1395_s25 + $0x20] sm:$0xff]  ;;  %v342_v22 = vld [vmem:[%s1395_s25 + $0x30] sm:$0xff]  ;;  %v343_v23 = vld [vmem:[%s1395_s25 + $0x38] sm:$0xff] }
  0x13   : > { %v344_v24 = vld [vmem:[%s1395_s25 + $0x40] sm:$0xff]  ;;  %v468_v25 = vld [vmem:[%s1647_s3 + $0x78] sm:$0xff]  ;;  %v467_v26 = vld [vmem:[%s1647_s3 + $0x70] sm:$0xff] }
  0x14   : > { %376 = vmatpush.msra.mxu0 %v363_v4  ;;  %473 = vmatpush.msra.mxu1 %v468_v25  ;;  %v466_v27 = vld [vmem:[%s1647_s3 + $0x68] sm:$0xff]  ;;  %v465_v29 = vld [vmem:[%s1647_s3 + $0x60] sm:$0xff]  ;;  %v464_v30 = vld [vmem:[%s1647_s3 + $0x58] sm:$0xff] }
  0x15   : > { %v345_v28 = vld [vmem:[%s1395_s25 + $0x48] sm:$0xff]  ;;  %v463_v31 = vld [vmem:[%s1647_s3 + $0x50] sm:$0xff]  ;;  %v461_v34 = vld [vmem:[%s1647_s3 + $0x40] sm:$0xff] }
  0x16   : > { %377 = vmatpush.msra.mxu0 %v362_v5  ;;  %474 = vmatpush.msra.mxu1 %v467_v26  ;;  %v462_v32 = vld [vmem:[%s1647_s3 + $0x48] sm:$0xff]  ;;  %v346_v33 = vld [vmem:[%s1395_s25 + $0x50] sm:$0xff]  ;;  %v460_v35 = vld [vmem:[%s1647_s3 + $0x38] sm:$0xff] }
  0x17   : > { %v459_v36 = vld [vmem:[%s1647_s3 + $0x30] sm:$0xff]  ;;  %v458_v37 = vld [vmem:[%s1647_s3 + $0x28] sm:$0xff]  ;;  %v347_v38 = vld [vmem:[%s1395_s25 + $0x58] sm:$0xff] }
  0x18   : > { %378 = vmatpush.msra.mxu0 %v361_v6  ;;  %475 = vmatpush.msra.mxu1 %v466_v27  ;;  %v457_v39 = vld [vmem:[%s1647_s3 + $0x20] sm:$0xff]  ;;  %v456_v40 = vld [vmem:[%s1647_s3 + $0x18] sm:$0xff]  ;;  %v455_v41 = vld [vmem:[%s1647_s3 + $0x10] sm:$0xff] }
  0x19   : > { %v348_v42 = vld [vmem:[%s1395_s25 + $0x60] sm:$0xff]  ;;  %v454_v43 = vld [vmem:[%s1647_s3 + $0x8] sm:$0xff]  ;;  %v350_v46 = vld [vmem:[%s1395_s25 + $0x70] sm:$0xff] }
  0x1a   : > { %379 = vmatpush.msra.mxu0 %v360_v7  ;;  %476 = vmatpush.msra.mxu1 %v465_v29  ;;  %v453_v44 = vld [vmem:[%s1647_s3] sm:$0xff]  ;;  %v349_v45 = vld [vmem:[%s1395_s25 + $0x68] sm:$0xff]  ;;  %v351_v47 = vld [vmem:[%s1395_s25 + $0x78] sm:$0xff] }
  0x1b   : > { %v1467_v48 = vld [vmem:[%s1646_s2] ss:$0 sm:$0xff]  ;;  %v557_v25 = vld [vmem:[%s1649_s5 + $0x18] sm:$0xff] }
  0x1c   : > { %380 = vmatpush.msra.mxu0 %v359_v8  ;;  %477 = vmatpush.msra.mxu1 %v464_v30  ;;  %v555_v30 = vld [vmem:[%s1649_s5 + $0x8] sm:$0xff] }
  0x1e   : > { %381 = vmatpush.msra.mxu0 %v358_v9  ;;  %478 = vmatpush.msra.mxu1 %v463_v31  ;;  %v554_v31 = vld [vmem:[%s1649_s5] sm:$0xff] }
  0x20   : > { %382 = vmatpush.msra.mxu0 %v357_v10  ;;  %479 = vmatpush.msra.mxu1 %v462_v32 }
  0x22   : > { %383 = vmatpush.msra.mxu0 %v356_v11  ;;  %480 = vmatpush.msra.mxu1 %v461_v34 }
  0x24   : > { %384 = vmatpush.msra.mxu0 %v355_v12  ;;  %481 = vmatpush.msra.mxu1 %v460_v35 }
  0x26   : > { %385 = vmatpush.msra.mxu0 %v354_v13  ;;  %482 = vmatpush.msra.mxu1 %v459_v36 }
  0x28   : > { %386 = vmatpush.msra.mxu0 %v353_v14  ;;  %483 = vmatpush.msra.mxu1 %v458_v37 }
  0x2a   : > { %387 = vmatpush.msra.mxu0 %v352_v15  ;;  %484 = vmatpush.msra.mxu1 %v457_v39 }
  0x2b   : > { %388 = vmatmul.f32.vlgmr.msra.gmra.mxu0 %v336_v16 }
  0x2c   : > { %485 = vmatpush.msra.mxu1 %v456_v40 }
  0x2e   : > { %486 = vmatpush.msra.mxu1 %v455_v41  ;;  %v1512_v41 = vld [vmem:[%s1648_s4] ss:$0 sm:$0xff] }
  0x30   : > { %487 = vmatpush.msra.mxu1 %v454_v43 }
  0x32   : > { %488 = vmatpush.msra.mxu1 %v453_v44 }
  0x33   : > { %391 = vmatmul.f32.gmra.mxu0 %v337_v17 }
  0x3b   : > { %394 = vmatmul.f32.gmra.mxu0 %v338_v18  ;;  %v561_v18 = vld [vmem:[%s1649_s5 + $0x38] sm:$0xff] }
  0x3c   : > { %623 = vmatpush.msra.mxu2 %v561_v18 }
  0x43   : > { %397 = vmatmul.f32.gmra.mxu0 %v339_v19 }
  0x4b   : > { %400 = vmatmul.f32.gmra.mxu0 %v340_v20 }
  0x53   : > { %403 = vmatmul.f32.gmra.mxu0 %v341_v21  ;;  %v560_v21 = vld [vmem:[%s1649_s5 + $0x30] sm:$0xff] }
  0x54   : > { %624 = vmatpush.msra.mxu2 %v560_v21  ;;  %v704_v21 = vld [vmem:[%s1651_s7 + $0x40] sm:$0xff] }
  0x5b   : > { %406 = vmatmul.f32.gmra.mxu0 %v342_v22 }
  0x63   : > { %409 = vmatmul.f32.gmra.mxu0 %v343_v23  ;;  %v559_v23 = vld [vmem:[%s1649_s5 + $0x28] sm:$0xff] }
  0x64   : > { %625 = vmatpush.msra.mxu2 %v559_v23  ;;  %v702_v23 = vld [vmem:[%s1651_s7 + $0x30] sm:$0xff] }
  0x6b   : > { %412 = vmatmul.f32.gmra.mxu0 %v344_v24  ;;  %v558_v24 = vld [vmem:[%s1649_s5 + $0x20] sm:$0xff] }
  0x6c   : > { %626 = vmatpush.msra.mxu2 %v558_v24  ;;  %v701_v24 = vld [vmem:[%s1651_s7 + $0x28] sm:$0xff] }
  0x6e   : > { %627 = vmatpush.msra.mxu2 %v557_v25 }
  0x73   : > { %415 = vmatmul.f32.gmra.mxu0 %v345_v28  ;;  %v556_v28 = vld [vmem:[%s1649_s5 + $0x10] sm:$0xff] }
  0x74   : > { %628 = vmatpush.msra.mxu2 %v556_v28 }
  0x76   : > { %629 = vmatpush.msra.mxu2 %v555_v30  ;;  %v698_v30 = vld [vmem:[%s1651_s7 + $0x10] sm:$0xff] }
  0x78   : > { %630 = vmatpush.msra.mxu2 %v554_v31 }
  0x7b   : > { %418 = vmatmul.f32.gmra.mxu0 %v346_v33 }
  0x83   : > { %421 = vmatmul.f32.gmra.mxu0 %v347_v38 }
  0x8b   : > { %424 = vmatmul.f32.gmra.mxu0 %v348_v42 }
  0x93   : > { %427 = vmatmul.f32.gmra.mxu0 %v349_v45 }
  0x9b   : > { %430 = vmatmul.f32.gmra.mxu0 %v350_v46 }
  0xa3   : > { %433 = vmatmul.f32.gmra.mxu0 %v351_v47 }
  0xa8   : > { %v389_v49 = vpop.f32.mrf.mxu0 }
  0xa9   : > { %v390_v50 = vadd.f32 %v1467_v48, %v389_v49 }
  0xab   : > { %v437_v51 = vmax.f32 %v390_v50, 0.0 }
  0xad   : > { %489 = vmatmul.f32.vlgmr.msra.gmra.mxu1 %v437_v51 }
  0xb0   : > { %v392_v52 = vpop.f32.mrf.mxu0 }
  0xb1   : > { %v393_v53 = vadd.f32 %v1467_v48, %v392_v52 }
  0xb3   : > { %v438_v54 = vmax.f32 %v393_v53, 0.0 }
  0xb5   : > { %492 = vmatmul.f32.gmra.mxu1 %v438_v54 }
  0xb8   : > { %v395_v55 = vpop.f32.mrf.mxu0 }
  0xb9   : > { %v396_v56 = vadd.f32 %v1467_v48, %v395_v55 }
  0xbb   : > { %v439_v57 = vmax.f32 %v396_v56, 0.0 }
  0xbd   : > { %495 = vmatmul.f32.gmra.mxu1 %v439_v57 }
  0xc0   : > { %v398_v58 = vpop.f32.mrf.mxu0 }
  0xc1   : > { %v399_v59 = vadd.f32 %v1467_v48, %v398_v58 }
  0xc3   : > { %v440_v60 = vmax.f32 %v399_v59, 0.0 }
  0xc5   : > { %498 = vmatmul.f32.gmra.mxu1 %v440_v60 }
  0xc8   : > { %v401_v61 = vpop.f32.mrf.mxu0 }
  0xc9   : > { %v402_v62 = vadd.f32 %v1467_v48, %v401_v61 }
  0xcb   : > { %v441_v63 = vmax.f32 %v402_v62, 0.0 }
  0xcd   : > { %501 = vmatmul.f32.gmra.mxu1 %v441_v63 }
  0xd0   : > { %v404_v0 = vpop.f32.mrf.mxu0 }
  0xd1   : > { %v405_v1 = vadd.f32 %v1467_v48, %v404_v0 }
  0xd3   : > { %v442_v2 = vmax.f32 %v405_v1, 0.0 }
  0xd5   : > { %504 = vmatmul.f32.gmra.mxu1 %v442_v2 }
  0xd8   : > { %v407_v3 = vpop.f32.mrf.mxu0 }
  0xd9   : > { %v408_v4 = vadd.f32 %v1467_v48, %v407_v3 }
  0xdb   : > { %v443_v5 = vmax.f32 %v408_v4, 0.0 }
  0xdd   : > { %507 = vmatmul.f32.gmra.mxu1 %v443_v5 }
  0xe0   : > { %v410_v6 = vpop.f32.mrf.mxu0 }
  0xe1   : > { %v411_v7 = vadd.f32 %v1467_v48, %v410_v6 }
  0xe3   : > { %v444_v8 = vmax.f32 %v411_v7, 0.0 }
  0xe5   : > { %510 = vmatmul.f32.gmra.mxu1 %v444_v8  ;;  %v711_v8 = vld [vmem:[%s1651_s7 + $0x78] sm:$0xff] }
  0xe6   : > { %716 = vmatpush.msra.mxu3 %v711_v8 }
  0xe8   : > { %v413_v9 = vpop.f32.mrf.mxu0 }
  0xe9   : > { %v414_v10 = vadd.f32 %v1467_v48, %v413_v9  ;;  %v710_v9 = vld [vmem:[%s1651_s7 + $0x70] sm:$0xff] }
  0xea   : > { %717 = vmatpush.msra.mxu3 %v710_v9 }
  0xeb   : > { %v445_v11 = vmax.f32 %v414_v10, 0.0 }
  0xed   : > { %513 = vmatmul.f32.gmra.mxu1 %v445_v11 }
  0xf0   : > { %v416_v12 = vpop.f32.mrf.mxu0 }
  0xf1   : > { %v417_v13 = vadd.f32 %v1467_v48, %v416_v12  ;;  %v709_v12 = vld [vmem:[%s1651_s7 + $0x68] sm:$0xff] }
  0xf2   : > { %718 = vmatpush.msra.mxu3 %v709_v12 }
  0xf3   : > { %v446_v14 = vmax.f32 %v417_v13, 0.0 }
  0xf5   : > { %516 = vmatmul.f32.gmra.mxu1 %v446_v14  ;;  %v708_v14 = vld [vmem:[%s1651_s7 + $0x60] sm:$0xff] }
  0xf6   : > { %719 = vmatpush.msra.mxu3 %v708_v14 }
  0xf8   : > { %v419_v15 = vpop.f32.mrf.mxu0 }
  0xf9   : > { %v420_v16 = vadd.f32 %v1467_v48, %v419_v15  ;;  %v707_v15 = vld [vmem:[%s1651_s7 + $0x58] sm:$0xff] }
  0xfa   : > { %720 = vmatpush.msra.mxu3 %v707_v15 }
  0xfb   : > { %v447_v17 = vmax.f32 %v420_v16, 0.0  ;;  %v706_v16 = vld [vmem:[%s1651_s7 + $0x50] sm:$0xff] }
  0xfc   : > { %721 = vmatpush.msra.mxu3 %v706_v16 }
  0xfd   : > { %519 = vmatmul.f32.gmra.mxu1 %v447_v17 }
 0x100   : > { %v422_v19 = vpop.f32.mrf.mxu0 }
 0x101   : > { %v423_v20 = vadd.f32 %v1467_v48, %v422_v19  ;;  %v705_v19 = vld [vmem:[%s1651_s7 + $0x48] sm:$0xff] }
 0x102   : > { %722 = vmatpush.msra.mxu3 %v705_v19 }
 0x103   : > { %v448_v22 = vmax.f32 %v423_v20, 0.0 }
 0x104   : > { %723 = vmatpush.msra.mxu3 %v704_v21 }
 0x105   : > { %522 = vmatmul.f32.gmra.mxu1 %v448_v22  ;;  %v703_v22 = vld [vmem:[%s1651_s7 + $0x38] sm:$0xff] }
 0x106   : > { %724 = vmatpush.msra.mxu3 %v703_v22 }
 0x108   : > { %v425_v26 = vpop.f32.mrf.mxu0  ;;  %725 = vmatpush.msra.mxu3 %v702_v23 }
 0x109   : > { %v426_v27 = vadd.f32 %v1467_v48, %v425_v26 }
 0x10a   : > { %726 = vmatpush.msra.mxu3 %v701_v24 }
 0x10b   : > { %v449_v29 = vmax.f32 %v426_v27, 0.0  ;;  %v700_v27 = vld [vmem:[%s1651_s7 + $0x20] sm:$0xff] }
 0x10c   : > { %727 = vmatpush.msra.mxu3 %v700_v27  ;;  %v1600_v27 = vld [vmem:[%s1652_s8] ss:$0 sm:$0xff] }
 0x10d   : > { %525 = vmatmul.f32.gmra.mxu1 %v449_v29  ;;  %v699_v29 = vld [vmem:[%s1651_s7 + $0x18] sm:$0xff] }
 0x10e   : > { %728 = vmatpush.msra.mxu3 %v699_v29 }
 0x110   : > { %v428_v32 = vpop.f32.mrf.mxu0  ;;  %729 = vmatpush.msra.mxu3 %v698_v30 }
 0x111   : > { %v429_v33 = vadd.f32 %v1467_v48, %v428_v32 }
 0x113   : > { %v450_v34 = vmax.f32 %v429_v33, 0.0  ;;  %v697_v33 = vld [vmem:[%s1651_s7 + $0x8] sm:$0xff] }
 0x114   : > { %730 = vmatpush.msra.mxu3 %v697_v33 }
 0x115   : > { %528 = vmatmul.f32.gmra.mxu1 %v450_v34 }
 0x118   : > { %v431_v35 = vpop.f32.mrf.mxu0 }
 0x119   : > { %v432_v36 = vadd.f32 %v1467_v48, %v431_v35  ;;  %v696_v35 = vld [vmem:[%s1651_s7] sm:$0xff] }
 0x11a   : > { %731 = vmatpush.msra.mxu3 %v696_v35 }
 0x11b   : > { %v451_v37 = vmax.f32 %v432_v36, 0.0 }
 0x11d   : > { %531 = vmatmul.f32.gmra.mxu1 %v451_v37 }
 0x120   : > { %v434_v38 = vpop.f32.mrf.mxu0 }
 0x121   : > { %v435_v39 = vadd.f32 %v1467_v48, %v434_v38 }
 0x123   : > { %v452_v40 = vmax.f32 %v435_v39, 0.0 }
 0x125   : > { %534 = vmatmul.f32.gmra.mxu1 %v452_v40 }
 0x12a   : > { %v490_v42 = vpop.f32.mrf.mxu1 }
 0x12b   : > { %v491_v43 = vadd.f32 %v1512_v41, %v490_v42 }
 0x12d   : > { %v538_v44 = vmax.f32 %v491_v43, 0.0  ;;  %v1210_v43 = vld [vmem:[%s1650_s6] ss:$0 sm:$0xff] }
 0x12f   : > { %1166 = vmatmul.msk.f32.vlgmr.msra.gmra.mxu2 %vm566_vm0, %v538_v44 }
 0x132   : > { %v493_v45 = vpop.f32.mrf.mxu1 }
 0x133   : > { %v494_v46 = vadd.f32 %v1512_v41, %v493_v45 }
 0x135   : > { %v539_v47 = vmax.f32 %v494_v46, 0.0 }
 0x137   : > { %1167 = vmatmul.msk.f32.gmra.mxu2 %vm566_vm0, %v539_v47 }
 0x13a   : > { %v496_v48 = vpop.f32.mrf.mxu1 }
 0x13b   : > { %v497_v49 = vadd.f32 %v1512_v41, %v496_v48 }
 0x13d   : > { %v540_v50 = vmax.f32 %v497_v49, 0.0 }
 0x13f   : > { %1168 = vmatmul.msk.f32.gmra.mxu2 %vm566_vm0, %v540_v50 }
 0x142   : > { %v499_v51 = vpop.f32.mrf.mxu1 }
 0x143   : > { %v500_v52 = vadd.f32 %v1512_v41, %v499_v51 }
 0x145   : > { %v541_v53 = vmax.f32 %v500_v52, 0.0 }
 0x147   : > { %1169 = vmatmul.msk.f32.gmra.mxu2 %vm566_vm0, %v541_v53 }
 0x14a   : > { %v502_v54 = vpop.f32.mrf.mxu1 }
 0x14b   : > { %v503_v55 = vadd.f32 %v1512_v41, %v502_v54 }
 0x14d   : > { %v542_v56 = vmax.f32 %v503_v55, 0.0 }
 0x14f   : > { %1170 = vmatmul.msk.f32.gmra.mxu2 %vm566_vm0, %v542_v56 }
 0x152   : > { %v505_v57 = vpop.f32.mrf.mxu1 }
 0x153   : > { %v506_v58 = vadd.f32 %v1512_v41, %v505_v57 }
 0x155   : > { %v543_v59 = vmax.f32 %v506_v58, 0.0 }
 0x157   : > { %1171 = vmatmul.msk.f32.gmra.mxu2 %vm566_vm0, %v543_v59 }
 0x15a   : > { %v508_v60 = vpop.f32.mrf.mxu1 }
 0x15b   : > { %v509_v61 = vadd.f32 %v1512_v41, %v508_v60 }
 0x15d   : > { %v544_v62 = vmax.f32 %v509_v61, 0.0 }
 0x15f   : > { %1172 = vmatmul.msk.f32.gmra.mxu2 %vm566_vm0, %v544_v62 }
 0x162   : > { %v511_v63 = vpop.f32.mrf.mxu1 }
 0x163   : > { %v512_v0 = vadd.f32 %v1512_v41, %v511_v63 }
 0x165   : > { %v545_v1 = vmax.f32 %v512_v0, 0.0 }
 0x167   : > { %1173 = vmatmul.msk.f32.gmra.mxu2 %vm566_vm0, %v545_v1 }
 0x16a   : > { %v514_v2 = vpop.f32.mrf.mxu1 }
 0x16b   : > { %v515_v3 = vadd.f32 %v1512_v41, %v514_v2 }
 0x16d   : > { %v546_v4 = vmax.f32 %v515_v3, 0.0 }
 0x16f   : > { %1174 = vmatmul.msk.f32.gmra.mxu2 %vm566_vm0, %v546_v4 }
 0x172   : > { %v517_v5 = vpop.f32.mrf.mxu1 }
 0x173   : > { %v518_v6 = vadd.f32 %v1512_v41, %v517_v5 }
 0x175   : > { %v547_v7 = vmax.f32 %v518_v6, 0.0 }
 0x177   : > { %1175 = vmatmul.msk.f32.gmra.mxu2 %vm566_vm0, %v547_v7 }
 0x17a   : > { %v520_v10 = vpop.f32.mrf.mxu1 }
 0x17b   : > { %v521_v11 = vadd.f32 %v1512_v41, %v520_v10 }
 0x17d   : > { %v548_v13 = vmax.f32 %v521_v11, 0.0 }
 0x17f   : > { %1176 = vmatmul.msk.f32.gmra.mxu2 %vm566_vm0, %v548_v13 }
 0x182   : > { %v523_v17 = vpop.f32.mrf.mxu1 }
 0x183   : > { %v524_v18 = vadd.f32 %v1512_v41, %v523_v17 }
 0x185   : > { %v549_v20 = vmax.f32 %v524_v18, 0.0 }
 0x187   : > { %1177 = vmatmul.msk.f32.gmra.mxu2 %vm566_vm0, %v549_v20 }
 0x18a   : > { %v526_v25 = vpop.f32.mrf.mxu1 }
 0x18b   : > { %v527_v26 = vadd.f32 %v1512_v41, %v526_v25 }
 0x18d   : > { %v550_v28 = vmax.f32 %v527_v26, 0.0 }
 0x18f   : > { %1178 = vmatmul.msk.f32.gmra.mxu2 %vm566_vm0, %v550_v28 }
 0x192   : > { %v529_v31 = vpop.f32.mrf.mxu1 }
 0x193   : > { %v530_v32 = vadd.f32 %v1512_v41, %v529_v31 }
 0x195   : > { %v551_v34 = vmax.f32 %v530_v32, 0.0 }
 0x197   : > { %1179 = vmatmul.msk.f32.gmra.mxu2 %vm566_vm0, %v551_v34 }
 0x19a   : > { %v532_v36 = vpop.f32.mrf.mxu1 }
 0x19b   : > { %v533_v37 = vadd.f32 %v1512_v41, %v532_v36 }
 0x19d   : > { %v552_v38 = vmax.f32 %v533_v37, 0.0 }
 0x19f   : > { %1180 = vmatmul.msk.f32.gmra.mxu2 %vm566_vm0, %v552_v38 }
 0x1a2   : > { %v535_v39 = vpop.f32.mrf.mxu1 }
 0x1a3   : > { %v536_v40 = vadd.f32 %v1512_v41, %v535_v39 }
 0x1a5   : > { %v553_v42 = vmax.f32 %v536_v40, 0.0 }
 0x1a7   : > { %1181 = vmatmul.msk.f32.gmra.mxu2 %vm566_vm0, %v553_v42 }
 0x1b2   : > { %v632_v44 = vpop.f32.mrf.mxu2 }
 0x1b3   : > { %v633_v45 = vadd.f32 %v1210_v43, %v632_v44 }
 0x1b5   : > { %v680_v46 = vmax.f32 %v633_v45, 0.0 }
 0x1b7   : > { %732 = vmatmul.f32.vlgmr.msra.gmra.mxu3 %v680_v46 }
 0x1ba   : > { %v635_v47 = vpop.f32.mrf.mxu2 }
 0x1bb   : > { %v636_v48 = vadd.f32 %v1210_v43, %v635_v47 }
 0x1bd   : > { %v681_v49 = vmax.f32 %v636_v48, 0.0 }
 0x1bf   : > { %735 = vmatmul.f32.gmra.mxu3 %v681_v49 }
 0x1c2   : > { %v638_v50 = vpop.f32.mrf.mxu2 }
 0x1c3   : > { %v639_v51 = vadd.f32 %v1210_v43, %v638_v50 }
 0x1c5   : > { %v682_v52 = vmax.f32 %v639_v51, 0.0 }
 0x1c7   : > { %738 = vmatmul.f32.gmra.mxu3 %v682_v52 }
 0x1ca   : > { %v641_v41 = vpop.f32.mrf.mxu2 }
 0x1cb   : > { %v642_v53 = vadd.f32 %v1210_v43, %v641_v41 }
 0x1cd   : > { %v683_v54 = vmax.f32 %v642_v53, 0.0 }
 0x1cf   : > { %741 = vmatmul.f32.gmra.mxu3 %v683_v54 }
 0x1d2   : > { %v644_v55 = vpop.f32.mrf.mxu2 }
 0x1d3   : > { %v645_v56 = vadd.f32 %v1210_v43, %v644_v55 }
 0x1d5   : > { %v684_v57 = vmax.f32 %v645_v56, 0.0 }
 0x1d7   : > { %744 = vmatmul.f32.gmra.mxu3 %v684_v57 }
 0x1da   : > { %v647_v58 = vpop.f32.mrf.mxu2 }
 0x1db   : > { %v648_v59 = vadd.f32 %v1210_v43, %v647_v58 }
 0x1dd   : > { %v685_v60 = vmax.f32 %v648_v59, 0.0 }
 0x1df   : > { %747 = vmatmul.f32.gmra.mxu3 %v685_v60 }
 0x1e2   : > { %v650_v61 = vpop.f32.mrf.mxu2 }
 0x1e3   : > { %v651_v62 = vadd.f32 %v1210_v43, %v650_v61 }
 0x1e5   : > { %v686_v63 = vmax.f32 %v651_v62, 0.0 }
 0x1e7   : > { %750 = vmatmul.f32.gmra.mxu3 %v686_v63 }
 0x1ea   : > { %v653_v0 = vpop.f32.mrf.mxu2 }
 0x1eb   : > { %v654_v1 = vadd.f32 %v1210_v43, %v653_v0 }
 0x1ed   : > { %v687_v2 = vmax.f32 %v654_v1, 0.0 }
 0x1ef   : > { %753 = vmatmul.f32.gmra.mxu3 %v687_v2 }
 0x1f2   : > { %v656_v3 = vpop.f32.mrf.mxu2 }
 0x1f3   : > { %v657_v4 = vadd.f32 %v1210_v43, %v656_v3 }
 0x1f5   : > { %v688_v5 = vmax.f32 %v657_v4, 0.0 }
 0x1f7   : > { %756 = vmatmul.f32.gmra.mxu3 %v688_v5 }
 0x1fa   : > { %v659_v6 = vpop.f32.mrf.mxu2 }
 0x1fb   : > { %v660_v7 = vadd.f32 %v1210_v43, %v659_v6 }
 0x1fd   : > { %v689_v8 = vmax.f32 %v660_v7, 0.0 }
 0x1ff   : > { %759 = vmatmul.f32.gmra.mxu3 %v689_v8 }
 0x202   : > { %v662_v9 = vpop.f32.mrf.mxu2 }
 0x203   : > { %v663_v10 = vadd.f32 %v1210_v43, %v662_v9 }
 0x205   : > { %v690_v11 = vmax.f32 %v663_v10, 0.0 }
 0x207   : > { %762 = vmatmul.f32.gmra.mxu3 %v690_v11 }
 0x20a   : > { %v665_v12 = vpop.f32.mrf.mxu2 }
 0x20b   : > { %v666_v13 = vadd.f32 %v1210_v43, %v665_v12 }
 0x20d   : > { %v691_v14 = vmax.f32 %v666_v13, 0.0 }
 0x20f   : > { %765 = vmatmul.f32.gmra.mxu3 %v691_v14 }
 0x212   : > { %v668_v15 = vpop.f32.mrf.mxu2 }
 0x213   : > { %v669_v16 = vadd.f32 %v1210_v43, %v668_v15 }
 0x215   : > { %v692_v17 = vmax.f32 %v669_v16, 0.0 }
 0x217   : > { %768 = vmatmul.f32.gmra.mxu3 %v692_v17 }
 0x21a   : > { %v671_v18 = vpop.f32.mrf.mxu2 }
 0x21b   : > { %v672_v19 = vadd.f32 %v1210_v43, %v671_v18 }
 0x21d   : > { %v693_v20 = vmax.f32 %v672_v19, 0.0 }
 0x21f   : > { %771 = vmatmul.f32.gmra.mxu3 %v693_v20 }
 0x222   : > { %v674_v21 = vpop.f32.mrf.mxu2 }
 0x223   : > { %v675_v22 = vadd.f32 %v1210_v43, %v674_v21 }
 0x225   : > { %v694_v23 = vmax.f32 %v675_v22, 0.0 }
 0x227   : > { %774 = vmatmul.f32.gmra.mxu3 %v694_v23 }
 0x22a   : > { %v677_v24 = vpop.f32.mrf.mxu2 }
 0x22b   : > { %v678_v25 = vadd.f32 %v1210_v43, %v677_v24 }
 0x22d   : > { %v695_v26 = vmax.f32 %v678_v25, 0.0 }
 0x22f   : > { %777 = vmatmul.f32.gmra.mxu3 %v695_v26 }
 0x23a   : > { %v733_v28 = vpop.f32.mrf.mxu3 }
 0x23b   : > { %v734_v29 = vadd.f32 %v1600_v27, %v733_v28 }
 0x23d   : > { %v1182_v30 = vmul.f32 -1.442695, %v734_v29 }
 0x23f   : > { %1212 = vpow2.f32 %v1182_v30 }
 0x242   : > { %v736_v31 = vpop.f32.mrf.mxu3 }
 0x243   : > { %v737_v32 = vadd.f32 %v1600_v27, %v736_v31 }
 0x245   : > { %v1213_v33 = vpop.eup %1212  ;;  %v1183_v34 = vmul.f32 -1.442695, %v737_v32 }
 0x246   : > { %v829_v35 = vadd.f32 1.0, %v1213_v33 }
 0x247   : > { %1214 = vpow2.f32 %v1183_v34 }
 0x248   : > { %1216 = vrcp.f32 %v829_v35  ;;  %v856_v45 = vand.u32 2147483648, %v829_v35  ;;  %v854_v48 = vand.u32 2147483647, %v829_v35  ;;  %vm850_vm2 = vweird.f32 %v829_v35 }
 0x24a   : > { %v739_v36 = vpop.f32.mrf.mxu3  ;;  %v857_v53 = vor.u32 1.1754944e-38, %v856_v45  ;;  %vm855_vm4 = vcmp.eq.f32.partialorder %v854_v48, 8.507059e+37 }
 0x24b   : > { %v740_v37 = vadd.f32 %v1600_v27, %v739_v36 }
 0x24d   : > { %v1215_v38 = vpop.eup %1214  ;;  %v1184_v39 = vmul.f32 -1.442695, %v740_v37 }
 0x24e   : > { %v1217_v40 = vpop.eup %1216  ;;  %v830_v42 = vadd.f32 1.0, %v1215_v38 }
 0x24f   : > { %v846_v43 = vmul.f32 %v1217_v40, %v829_v35  ;;  %1218 = vpow2.f32 %v1184_v39  ;;  %vm851_vm1 = vweird.f32 %v1217_v40 }
 0x250   : > { %1220 = vrcp.f32 %v830_v42  ;;  %vm852_vm3 = vmor %vm850_vm2, %vm851_vm1  ;;  %v871_v59 = vand.u32 2147483648, %v830_v42  ;;  %v869_v62 = vand.u32 2147483647, %v830_v42  ;;  %vm865_vm6 = vweird.f32 %v830_v42 }
 0x251   : > { %v847_v44 = vsub.f32 1.0, %v846_v43 }
 0x252   : > { %v742_v46 = vpop.f32.mrf.mxu3  ;;  %v872_v4 = vor.u32 1.1754944e-38, %v871_v59  ;;  %vm870_vm8 = vcmp.eq.f32.partialorder %v869_v62, 8.507059e+37 }
 0x253   : > { %v848_v47 = vmul.f32 %v1217_v40, %v847_v44  ;;  %v743_v49 = vadd.f32 %v1600_v27, %v742_v46 }
 0x255   : > { %v1219_v50 = vpop.eup %1218  ;;  %v849_v51 = vadd.f32 %v1217_v40, %v848_v47  ;;  %v1185_v52 = vmul.f32 -1.442695, %v743_v49 }
 0x256   : > { %v1221_v41 = vpop.eup %1220  ;;  %v831_v54 = vadd.f32 1.0, %v1219_v50 }
 0x257   : > { %v853_v55 = vsel %vm852_vm3, %v1217_v40, %v849_v51  ;;  %v861_v56 = vmul.f32 %v1221_v41, %v830_v42  ;;  %1222 = vpow2.f32 %v1185_v52  ;;  %vm866_vm5 = vweird.f32 %v1221_v41 }
 0x258   : > { %v858_v57 = vsel %vm855_vm4, %v857_v53, %v853_v55  ;;  %1224 = vrcp.f32 %v831_v54  ;;  %vm867_vm7 = vmor %vm865_vm6, %vm866_vm5  ;;  %v886_v10 = vand.u32 2147483648, %v831_v54  ;;  %v884_v13 = vand.u32 2147483647, %v831_v54 }
 0x259   : > { %1085 = vst [vmem:[%s1611_s11] sm:$0xff] %v858_v57  ;;  %v862_v58 = vsub.f32 1.0, %v861_v56  ;;  %vm880_vm10 = vweird.f32 %v831_v54 }
 0x25a   : > { %v745_v60 = vpop.f32.mrf.mxu3  ;;  %v887_v19 = vor.u32 1.1754944e-38, %v886_v10  ;;  %vm885_vm12 = vcmp.eq.f32.partialorder %v884_v13, 8.507059e+37 }
 0x25b   : > { %v863_v61 = vmul.f32 %v1221_v41, %v862_v58  ;;  %v746_v63 = vadd.f32 %v1600_v27, %v745_v60 }
 0x25d   : > { %v1223_v0 = vpop.eup %1222  ;;  %v864_v1 = vadd.f32 %v1221_v41, %v863_v61  ;;  %v1186_v2 = vmul.f32 -1.442695, %v746_v63 }
 0x25e   : > { %v1225_v3 = vpop.eup %1224  ;;  %v832_v5 = vadd.f32 1.0, %v1223_v0 }
 0x25f   : > { %v868_v6 = vsel %vm867_vm7, %v1221_v41, %v864_v1  ;;  %v876_v7 = vmul.f32 %v1225_v3, %v831_v54  ;;  %1226 = vpow2.f32 %v1186_v2  ;;  %vm881_vm9 = vweird.f32 %v1225_v3 }
 0x260   : > { %v873_v8 = vsel %vm870_vm8, %v872_v4, %v868_v6  ;;  %1228 = vrcp.f32 %v832_v5  ;;  %vm882_vm11 = vmor %vm880_vm10, %vm881_vm9  ;;  %v901_v25 = vand.u32 2147483648, %v832_v5  ;;  %v899_v29 = vand.u32 2147483647, %v832_v5 }
 0x261   : > { %1086 = vst [vmem:[%s1611_s11 + $0x8] sm:$0xff] %v873_v8  ;;  %v877_v9 = vsub.f32 1.0, %v876_v7  ;;  %vm895_vm14 = vweird.f32 %v832_v5 }
 0x262   : > { %v748_v11 = vpop.f32.mrf.mxu3  ;;  %v902_v35 = vor.u32 1.1754944e-38, %v901_v25  ;;  %vm900_vm0 = vcmp.eq.f32.partialorder %v899_v29, 8.507059e+37 }
 0x263   : > { %v878_v12 = vmul.f32 %v1225_v3, %v877_v9  ;;  %v749_v14 = vadd.f32 %v1600_v27, %v748_v11 }
 0x265   : > { %v1227_v15 = vpop.eup %1226  ;;  %v879_v16 = vadd.f32 %v1225_v3, %v878_v12  ;;  %v1187_v17 = vmul.f32 -1.442695, %v749_v14 }
 0x266   : > { %v1229_v18 = vpop.eup %1228  ;;  %v833_v20 = vadd.f32 1.0, %v1227_v15 }
 0x267   : > { %v883_v21 = vsel %vm882_vm11, %v1225_v3, %v879_v16  ;;  %v891_v22 = vmul.f32 %v1229_v18, %v832_v5  ;;  %1230 = vpow2.f32 %v1187_v17  ;;  %vm896_vm13 = vweird.f32 %v1229_v18 }
 0x268   : > { %v888_v23 = vsel %vm885_vm12, %v887_v19, %v883_v21  ;;  %1232 = vrcp.f32 %v833_v20  ;;  %vm897_vm15 = vmor %vm895_vm14, %vm896_vm13  ;;  %v916_v42 = vand.u32 2147483648, %v833_v20  ;;  %v914_v45 = vand.u32 2147483647, %v833_v20 }
 0x269   : > { %1087 = vst [vmem:[%s1611_s11 + $0x10] sm:$0xff] %v888_v23  ;;  %v892_v24 = vsub.f32 1.0, %v891_v22  ;;  %vm910_vm2 = vweird.f32 %v833_v20 }
 0x26a   : > { %v751_v26 = vpop.f32.mrf.mxu3  ;;  %v917_v51 = vor.u32 1.1754944e-38, %v916_v42  ;;  %vm915_vm4 = vcmp.eq.f32.partialorder %v914_v45, 8.507059e+37 }
 0x26b   : > { %v893_v28 = vmul.f32 %v1229_v18, %v892_v24  ;;  %v752_v30 = vadd.f32 %v1600_v27, %v751_v26 }
 0x26d   : > { %v1231_v31 = vpop.eup %1230  ;;  %v894_v32 = vadd.f32 %v1229_v18, %v893_v28  ;;  %v1188_v33 = vmul.f32 -1.442695, %v752_v30 }
 0x26e   : > { %v1233_v34 = vpop.eup %1232  ;;  %v834_v36 = vadd.f32 1.0, %v1231_v31 }
 0x26f   : > { %v898_v37 = vsel %vm897_vm15, %v1229_v18, %v894_v32  ;;  %v906_v38 = vmul.f32 %v1233_v34, %v833_v20  ;;  %1234 = vpow2.f32 %v1188_v33  ;;  %vm911_vm1 = vweird.f32 %v1233_v34 }
 0x270   : > { %v903_v39 = vsel %vm900_vm0, %v902_v35, %v898_v37  ;;  %1236 = vrcp.f32 %v834_v36  ;;  %vm912_vm3 = vmor %vm910_vm2, %vm911_vm1  ;;  %v931_v56 = vand.u32 2147483648, %v834_v36  ;;  %v929_v59 = vand.u32 2147483647, %v834_v36 }
 0x271   : > { %1088 = vst [vmem:[%s1611_s11 + $0x18] sm:$0xff] %v903_v39  ;;  %v907_v40 = vsub.f32 1.0, %v906_v38  ;;  %vm925_vm6 = vweird.f32 %v834_v36 }
 0x272   : > { %v754_v43 = vpop.f32.mrf.mxu3  ;;  %v932_v1 = vor.u32 1.1754944e-38, %v931_v56  ;;  %vm930_vm8 = vcmp.eq.f32.partialorder %v929_v59, 8.507059e+37 }
 0x273   : > { %v908_v44 = vmul.f32 %v1233_v34, %v907_v40  ;;  %v755_v46 = vadd.f32 %v1600_v27, %v754_v43 }
 0x275   : > { %v1235_v47 = vpop.eup %1234  ;;  %v909_v48 = vadd.f32 %v1233_v34, %v908_v44  ;;  %v1189_v49 = vmul.f32 -1.442695, %v755_v46 }
 0x276   : > { %v1237_v50 = vpop.eup %1236  ;;  %v835_v52 = vadd.f32 1.0, %v1235_v47 }
 0x277   : > { %v913_v41 = vsel %vm912_vm3, %v1233_v34, %v909_v48  ;;  %v921_v53 = vmul.f32 %v1237_v50, %v834_v36  ;;  %1238 = vpow2.f32 %v1189_v49  ;;  %vm926_vm5 = vweird.f32 %v1237_v50 }
 0x278   : > { %v918_v54 = vsel %vm915_vm4, %v917_v51, %v913_v41  ;;  %1240 = vrcp.f32 %v835_v52  ;;  %vm927_vm7 = vmor %vm925_vm6, %vm926_vm5  ;;  %v946_v7 = vand.u32 2147483648, %v835_v52  ;;  %v944_v10 = vand.u32 2147483647, %v835_v52 }
 0x279   : > { %1089 = vst [vmem:[%s1611_s11 + $0x20] sm:$0xff] %v918_v54  ;;  %v922_v55 = vsub.f32 1.0, %v921_v53  ;;  %vm940_vm10 = vweird.f32 %v835_v52 }
 0x27a   : > { %v757_v57 = vpop.f32.mrf.mxu3  ;;  %v947_v16 = vor.u32 1.1754944e-38, %v946_v7  ;;  %vm945_vm12 = vcmp.eq.f32.partialorder %v944_v10, 8.507059e+37 }
 0x27b   : > { %v923_v58 = vmul.f32 %v1237_v50, %v922_v55  ;;  %v758_v60 = vadd.f32 %v1600_v27, %v757_v57 }
 0x27d   : > { %v1239_v61 = vpop.eup %1238  ;;  %v924_v62 = vadd.f32 %v1237_v50, %v923_v58  ;;  %v1190_v63 = vmul.f32 -1.442695, %v758_v60 }
 0x27e   : > { %v1241_v0 = vpop.eup %1240  ;;  %v836_v2 = vadd.f32 1.0, %v1239_v61 }
 0x27f   : > { %v928_v3 = vsel %vm927_vm7, %v1237_v50, %v924_v62  ;;  %v936_v4 = vmul.f32 %v1241_v0, %v835_v52  ;;  %1242 = vpow2.f32 %v1190_v63  ;;  %vm941_vm9 = vweird.f32 %v1241_v0 }
 0x280   : > { %v933_v5 = vsel %vm930_vm8, %v932_v1, %v928_v3  ;;  %1244 = vrcp.f32 %v836_v2  ;;  %vm942_vm11 = vmor %vm940_vm10, %vm941_vm9  ;;  %v961_v22 = vand.u32 2147483648, %v836_v2  ;;  %v959_v25 = vand.u32 2147483647, %v836_v2 }
 0x281   : > { %1090 = vst [vmem:[%s1611_s11 + $0x28] sm:$0xff] %v933_v5  ;;  %v937_v6 = vsub.f32 1.0, %v936_v4  ;;  %vm955_vm14 = vweird.f32 %v836_v2 }
 0x282   : > { %v760_v8 = vpop.f32.mrf.mxu3  ;;  %v962_v32 = vor.u32 1.1754944e-38, %v961_v22  ;;  %vm960_vm0 = vcmp.eq.f32.partialorder %v959_v25, 8.507059e+37 }
 0x283   : > { %v938_v9 = vmul.f32 %v1241_v0, %v937_v6  ;;  %v761_v11 = vadd.f32 %v1600_v27, %v760_v8 }
 0x285   : > { %v1243_v12 = vpop.eup %1242  ;;  %v939_v13 = vadd.f32 %v1241_v0, %v938_v9  ;;  %v1191_v14 = vmul.f32 -1.442695, %v761_v11 }
 0x286   : > { %v1245_v15 = vpop.eup %1244  ;;  %v837_v17 = vadd.f32 1.0, %v1243_v12 }
 0x287   : > { %v943_v18 = vsel %vm942_vm11, %v1241_v0, %v939_v13  ;;  %v951_v19 = vmul.f32 %v1245_v15, %v836_v2  ;;  %1246 = vpow2.f32 %v1191_v14  ;;  %vm956_vm13 = vweird.f32 %v1245_v15 }
 0x288   : > { %v948_v20 = vsel %vm945_vm12, %v947_v16, %v943_v18  ;;  %1248 = vrcp.f32 %v837_v17  ;;  %vm957_vm15 = vmor %vm955_vm14, %vm956_vm13  ;;  %v976_v38 = vand.u32 2147483648, %v837_v17  ;;  %v974_v42 = vand.u32 2147483647, %v837_v17 }
 0x289   : > { %1091 = vst [vmem:[%s1611_s11 + $0x30] sm:$0xff] %v948_v20  ;;  %v952_v21 = vsub.f32 1.0, %v951_v19  ;;  %vm970_vm2 = vweird.f32 %v837_v17 }
 0x28a   : > { %v763_v23 = vpop.f32.mrf.mxu3  ;;  %v977_v48 = vor.u32 1.1754944e-38, %v976_v38  ;;  %vm975_vm4 = vcmp.eq.f32.partialorder %v974_v42, 8.507059e+37 }
 0x28b   : > { %v953_v24 = vmul.f32 %v1245_v15, %v952_v21  ;;  %v764_v26 = vadd.f32 %v1600_v27, %v763_v23 }
 0x28d   : > { %v1247_v28 = vpop.eup %1246  ;;  %v954_v29 = vadd.f32 %v1245_v15, %v953_v24  ;;  %v1192_v30 = vmul.f32 -1.442695, %v764_v26 }
 0x28e   : > { %v1249_v31 = vpop.eup %1248  ;;  %v838_v33 = vadd.f32 1.0, %v1247_v28 }
 0x28f   : > { %v958_v34 = vsel %vm957_vm15, %v1245_v15, %v954_v29  ;;  %v966_v35 = vmul.f32 %v1249_v31, %v837_v17  ;;  %1250 = vpow2.f32 %v1192_v30  ;;  %vm971_vm1 = vweird.f32 %v1249_v31 }
 0x290   : > { %v963_v36 = vsel %vm960_vm0, %v962_v32, %v958_v34  ;;  %1252 = vrcp.f32 %v838_v33  ;;  %vm972_vm3 = vmor %vm970_vm2, %vm971_vm1  ;;  %v991_v53 = vand.u32 2147483648, %v838_v33  ;;  %v989_v56 = vand.u32 2147483647, %v838_v33 }
 0x291   : > { %1092 = vst [vmem:[%s1611_s11 + $0x38] sm:$0xff] %v963_v36  ;;  %v967_v37 = vsub.f32 1.0, %v966_v35  ;;  %vm985_vm6 = vweird.f32 %v838_v33 }
 0x292   : > { %v766_v39 = vpop.f32.mrf.mxu3  ;;  %v992_v62 = vor.u32 1.1754944e-38, %v991_v53  ;;  %vm990_vm8 = vcmp.eq.f32.partialorder %v989_v56, 8.507059e+37 }
 0x293   : > { %v968_v40 = vmul.f32 %v1249_v31, %v967_v37  ;;  %v767_v43 = vadd.f32 %v1600_v27, %v766_v39 }
 0x295   : > { %v1251_v44 = vpop.eup %1250  ;;  %v969_v45 = vadd.f32 %v1249_v31, %v968_v40  ;;  %v1193_v46 = vmul.f32 -1.442695, %v767_v43 }
 0x296   : > { %v1253_v47 = vpop.eup %1252  ;;  %v839_v49 = vadd.f32 1.0, %v1251_v44 }
 0x297   : > { %v973_v50 = vsel %vm972_vm3, %v1249_v31, %v969_v45  ;;  %v981_v51 = vmul.f32 %v1253_v47, %v838_v33  ;;  %1254 = vpow2.f32 %v1193_v46  ;;  %vm986_vm5 = vweird.f32 %v1253_v47 }
 0x298   : > { %v978_v52 = vsel %vm975_vm4, %v977_v48, %v973_v50  ;;  %1256 = vrcp.f32 %v839_v49  ;;  %vm987_vm7 = vmor %vm985_vm6, %vm986_vm5  ;;  %v1006_v4 = vand.u32 2147483648, %v839_v49  ;;  %v1004_v7 = vand.u32 2147483647, %v839_v49 }
 0x299   : > { %1093 = vst [vmem:[%s1611_s11 + $0x40] sm:$0xff] %v978_v52  ;;  %v982_v41 = vsub.f32 1.0, %v981_v51  ;;  %vm1000_vm10 = vweird.f32 %v839_v49 }
 0x29a   : > { %v769_v54 = vpop.f32.mrf.mxu3  ;;  %v1007_v13 = vor.u32 1.1754944e-38, %v1006_v4  ;;  %vm1005_vm12 = vcmp.eq.f32.partialorder %v1004_v7, 8.507059e+37 }
 0x29b   : > { %v983_v55 = vmul.f32 %v1253_v47, %v982_v41  ;;  %v770_v57 = vadd.f32 %v1600_v27, %v769_v54 }
 0x29d   : > { %v1255_v58 = vpop.eup %1254  ;;  %v984_v59 = vadd.f32 %v1253_v47, %v983_v55  ;;  %v1194_v60 = vmul.f32 -1.442695, %v770_v57 }
 0x29e   : > { %v1257_v61 = vpop.eup %1256  ;;  %v840_v63 = vadd.f32 1.0, %v1255_v58 }
 0x29f   : > { %v988_v0 = vsel %vm987_vm7, %v1253_v47, %v984_v59  ;;  %v996_v1 = vmul.f32 %v1257_v61, %v839_v49  ;;  %1258 = vpow2.f32 %v1194_v60  ;;  %vm1001_vm9 = vweird.f32 %v1257_v61 }
 0x2a0   : > { %v993_v2 = vsel %vm990_vm8, %v992_v62, %v988_v0  ;;  %1260 = vrcp.f32 %v840_v63  ;;  %vm1002_vm11 = vmor %vm1000_vm10, %vm1001_vm9  ;;  %v1021_v19 = vand.u32 2147483648, %v840_v63  ;;  %v1019_v22 = vand.u32 2147483647, %v840_v63 }
 0x2a1   : > { %1094 = vst [vmem:[%s1611_s11 + $0x48] sm:$0xff] %v993_v2  ;;  %v997_v3 = vsub.f32 1.0, %v996_v1  ;;  %vm1015_vm14 = vweird.f32 %v840_v63 }
 0x2a2   : > { %v772_v5 = vpop.f32.mrf.mxu3  ;;  %v1022_v29 = vor.u32 1.1754944e-38, %v1021_v19  ;;  %vm1020_vm0 = vcmp.eq.f32.partialorder %v1019_v22, 8.507059e+37 }
 0x2a3   : > { %v998_v6 = vmul.f32 %v1257_v61, %v997_v3  ;;  %v773_v8 = vadd.f32 %v1600_v27, %v772_v5 }
 0x2a5   : > { %v1259_v9 = vpop.eup %1258  ;;  %v999_v10 = vadd.f32 %v1257_v61, %v998_v6  ;;  %v1195_v11 = vmul.f32 -1.442695, %v773_v8 }
 0x2a6   : > { %v1261_v12 = vpop.eup %1260  ;;  %v841_v14 = vadd.f32 1.0, %v1259_v9 }
 0x2a7   : > { %v1003_v15 = vsel %vm1002_vm11, %v1257_v61, %v999_v10  ;;  %v1011_v16 = vmul.f32 %v1261_v12, %v840_v63  ;;  %1262 = vpow2.f32 %v1195_v11  ;;  %vm1016_vm13 = vweird.f32 %v1261_v12 }
 0x2a8   : > { %v1008_v17 = vsel %vm1005_vm12, %v1007_v13, %v1003_v15  ;;  %1264 = vrcp.f32 %v841_v14  ;;  %vm1017_vm15 = vmor %vm1015_vm14, %vm1016_vm13  ;;  %v1036_v35 = vand.u32 2147483648, %v841_v14  ;;  %v1034_v38 = vand.u32 2147483647, %v841_v14 }
 0x2a9   : > { %1095 = vst [vmem:[%s1611_s11 + $0x50] sm:$0xff] %v1008_v17  ;;  %v1012_v18 = vsub.f32 1.0, %v1011_v16  ;;  %vm1030_vm2 = vweird.f32 %v841_v14 }
 0x2aa   : > { %v775_v20 = vpop.f32.mrf.mxu3  ;;  %v1037_v45 = vor.u32 1.1754944e-38, %v1036_v35  ;;  %vm1035_vm4 = vcmp.eq.f32.partialorder %v1034_v38, 8.507059e+37 }
 0x2ab   : > { %v1013_v21 = vmul.f32 %v1261_v12, %v1012_v18  ;;  %v776_v23 = vadd.f32 %v1600_v27, %v775_v20 }
 0x2ad   : > { %v1263_v24 = vpop.eup %1262  ;;  %v1014_v25 = vadd.f32 %v1261_v12, %v1013_v21  ;;  %v1196_v26 = vmul.f32 -1.442695, %v776_v23 }
 0x2ae   : > { %v1265_v28 = vpop.eup %1264  ;;  %v842_v30 = vadd.f32 1.0, %v1263_v24 }
 0x2af   : > { %v1018_v31 = vsel %vm1017_vm15, %v1261_v12, %v1014_v25  ;;  %v1026_v32 = vmul.f32 %v1265_v28, %v841_v14  ;;  %1266 = vpow2.f32 %v1196_v26  ;;  %vm1031_vm1 = vweird.f32 %v1265_v28 }
 0x2b0   : > { %v1023_v33 = vsel %vm1020_vm0, %v1022_v29, %v1018_v31  ;;  %1268 = vrcp.f32 %v842_v30  ;;  %vm1032_vm3 = vmor %vm1030_vm2, %vm1031_vm1  ;;  %v1051_v51 = vand.u32 2147483648, %v842_v30  ;;  %vm1045_vm6 = vweird.f32 %v842_v30 }
 0x2b1   : > { %1096 = vst [vmem:[%s1611_s11 + $0x58] sm:$0xff] %v1023_v33  ;;  %v1027_v34 = vsub.f32 1.0, %v1026_v32 }
 0x2b2   : > { %v778_v36 = vpop.f32.mrf.mxu3  ;;  %v1052_v55 = vor.u32 1.1754944e-38, %v1051_v51 }
 0x2b3   : > { %v1028_v37 = vmul.f32 %v1265_v28, %v1027_v34  ;;  %v779_v39 = vadd.f32 %v1600_v27, %v778_v36  ;;  %v1049_v27 = vand.u32 2147483647, %v842_v30 }
 0x2b5   : > { %v1267_v40 = vpop.eup %1266  ;;  %v1029_v42 = vadd.f32 %v1265_v28, %v1028_v37  ;;  %v1197_v43 = vmul.f32 -1.442695, %v779_v39  ;;  %vm1050_vm8 = vcmp.eq.f32.partialorder %v1049_v27, 8.507059e+37 }
 0x2b6   : > { %v1269_v44 = vpop.eup %1268  ;;  %v843_v46 = vadd.f32 1.0, %v1267_v40 }
 0x2b7   : > { %v1033_v47 = vsel %vm1032_vm3, %v1265_v28, %v1029_v42  ;;  %v1041_v48 = vmul.f32 %v1269_v44, %v842_v30  ;;  %1270 = vpow2.f32 %v1197_v43  ;;  %vm1046_vm5 = vweird.f32 %v1269_v44 }
 0x2b8   : > { %v1038_v49 = vsel %vm1035_vm4, %v1037_v45, %v1033_v47  ;;  %1272 = vrcp.f32 %v843_v46  ;;  %vm1047_vm7 = vmor %vm1045_vm6, %vm1046_vm5  ;;  %v1066_v61 = vand.u32 2147483648, %v843_v46  ;;  %v1064_v63 = vand.u32 2147483647, %v843_v46 }
 0x2b9   : > { %1097 = vst [vmem:[%s1611_s11 + $0x60] sm:$0xff] %v1038_v49  ;;  %v1042_v50 = vsub.f32 1.0, %v1041_v48  ;;  %vm1060_vm10 = vweird.f32 %v843_v46 }
 0x2ba   : > { %v1067_v2 = vor.u32 1.1754944e-38, %v1066_v61  ;;  %vm1065_vm12 = vcmp.eq.f32.partialorder %v1064_v63, 8.507059e+37 }
 0x2bb   : > { %v1043_v52 = vmul.f32 %v1269_v44, %v1042_v50 }
 0x2bd   : > { %v1271_v41 = vpop.eup %1270  ;;  %v1044_v53 = vadd.f32 %v1269_v44, %v1043_v52 }
 0x2be   : > { %v1273_v54 = vpop.eup %1272  ;;  %v844_v56 = vadd.f32 1.0, %v1271_v41 }
 0x2bf   : > { %v1048_v57 = vsel %vm1047_vm7, %v1269_v44, %v1044_v53  ;;  %v1056_v58 = vmul.f32 %v1273_v54, %v843_v46  ;;  %vm1061_vm9 = vweird.f32 %v1273_v54 }
 0x2c0   : > { %v1053_v59 = vsel %vm1050_vm8, %v1052_v55, %v1048_v57  ;;  %1274 = vrcp.f32 %v844_v56  ;;  %vm1062_vm11 = vmor %vm1060_vm10, %vm1061_vm9  ;;  %v1081_v7 = vand.u32 2147483648, %v844_v56  ;;  %v1079_v9 = vand.u32 2147483647, %v844_v56 }
 0x2c1   : > { %1098 = vst [vmem:[%s1611_s11 + $0x68] sm:$0xff] %v1053_v59  ;;  %v1057_v60 = vsub.f32 1.0, %v1056_v58  ;;  %vm1075_vm14 = vweird.f32 %v844_v56 }
 0x2c2   : > { %v1082_v11 = vor.u32 1.1754944e-38, %v1081_v7  ;;  %vm1080_vm0 = vcmp.eq.f32.partialorder %v1079_v9, 8.507059e+37 }
 0x2c3   : > { %v1058_v62 = vmul.f32 %v1273_v54, %v1057_v60 }
 0x2c5   : > { %v1059_v0 = vadd.f32 %v1273_v54, %v1058_v62 }
 0x2c6   : > { %v1275_v1 = vpop.eup %1274 }
 0x2c7   : > { %v1063_v3 = vsel %vm1062_vm11, %v1273_v54, %v1059_v0  ;;  %v1071_v4 = vmul.f32 %v1275_v1, %v844_v56  ;;  %vm1076_vm13 = vweird.f32 %v1275_v1 }
 0x2c8   : > { %v1068_v5 = vsel %vm1065_vm12, %v1067_v2, %v1063_v3  ;;  %vm1077_vm15 = vmor %vm1075_vm14, %vm1076_vm13 }
 0x2c9   : > { %1099 = vst [vmem:[%s1611_s11 + $0x70] sm:$0xff] %v1068_v5  ;;  %v1072_v6 = vsub.f32 1.0, %v1071_v4 }
 0x2cb   : > { %v1073_v8 = vmul.f32 %v1275_v1, %v1072_v6 }
 0x2cd   : > { %v1074_v10 = vadd.f32 %v1275_v1, %v1073_v8 }
 0x2cf   : > { %v1078_v12 = vsel %vm1077_vm15, %v1275_v1, %v1074_v10 }
 0x2d0   : > { %v1083_v13 = vsel %vm1080_vm0, %v1082_v11, %v1078_v12 }
 0x2d1   : > { %1100 = vst [vmem:[%s1611_s11 + $0x78] sm:$0xff] %v1083_v13 }
 0x2d2 PF: > { %s19_s30 = sadd.s32 1, %s1282_s30  }
 0x2d3   : > { %p16_p4 = scmp.ge.s32.totalorder %s19_s30, 4  }
 0x2d5   :  { %18 = sbr.rel (!%p16_p4) target bundleno = 1 (0x1), region = 86 }

</bundles_post_ra>
